<compile_context>
chip_gen: v6e
topology: v6e:2x2x1
jax: 0.10.0
libtpu: 0.0.40
codegen_flags: <defaults>
</compile_context>

<pallas_src>
import jax
import jax.numpy as jnp
from jax.experimental import pallas as pl
from jax.experimental.pallas import tpu as pltpu

LANE = 128


def _round_up(x, m):
    return (x + m - 1) // m * m


def attend_kernel(a_ref, b_ref, w1_ref, b1_ref, w2_ref, b2_ref,
                  beta_ref, alpha_ref):
    # a: (BBLK, La, Ep), b: (BBLK, Lb, Ep), w1: (Ep, Hp), w2: (Hp, Hp),
    # b1/b2: (1, Hp). Ep/Hp are 128-multiples.
    a = a_ref[...]
    b = b_ref[...]
    bblk, la, ep = a.shape
    _, lb, _ = b.shape
    hp = w1_ref.shape[1]

    w1 = w1_ref[...].astype(jnp.bfloat16)
    w2 = w2_ref[...].astype(jnp.bfloat16)
    b1 = b1_ref[...]                       # (1, Hp) f32
    b2 = b2_ref[...]

    # ---- fused MLP f(.) over A and B together: one fat matmul per layer ----
    x = jnp.concatenate(
        [a.reshape(bblk * la, ep), b.reshape(bblk * lb, ep)], axis=0)
    x = x.astype(jnp.bfloat16)             # (BBLK*(La+Lb), Ep)

    h = jnp.dot(x, w1, preferred_element_type=jnp.float32) + b1
    h = jnp.maximum(h, 0.0)
    h = jnp.dot(h.astype(jnp.bfloat16), w2,
                preferred_element_type=jnp.float32) + b2
    h = jnp.maximum(h, 0.0)                # (BBLK*(La+Lb), Hp) f32

    f_a = h[:bblk * la].reshape(bblk, la, hp).astype(jnp.bfloat16)
    f_b = h[bblk * la:].reshape(bblk, lb, hp).astype(jnp.bfloat16)

    def softmax_lastdim(s):                # f32 in, f32 out
        m = jnp.max(s, axis=-1, keepdims=True)
        p = jnp.exp(s - m)
        return p * pl.reciprocal(jnp.sum(p, axis=-1, keepdims=True),
                                 approx=True)

    a_bf = a.astype(jnp.bfloat16)
    b_bf = b.astype(jnp.bfloat16)

    # beta = softmax(e, -1) @ B,  e[b,i,j] = <f(A)_i, f(B)_j>
    e = jnp.einsum('bih,bjh->bij', f_a, f_b,
                   preferred_element_type=jnp.float32)          # (BBLK,La,Lb)
    beta = jnp.einsum('bij,bjd->bid',
                      softmax_lastdim(e).astype(jnp.bfloat16), b_bf,
                      preferred_element_type=jnp.float32)       # (BBLK,La,Ep)
    beta_ref[...] = beta.astype(beta_ref.dtype)

    # alpha = softmax(e^T, -1) @ A; compute the transposed score matrix
    # directly on the MXU (no XLU transpose of e).
    e_t = jnp.einsum('bjh,bih->bji', f_b, f_a,
                     preferred_element_type=jnp.float32)        # (BBLK,Lb,La)
    alpha = jnp.einsum('bij,bjd->bid',
                       softmax_lastdim(e_t).astype(jnp.bfloat16), a_bf,
                       preferred_element_type=jnp.float32)      # (BBLK,Lb,Ep)
    alpha_ref[...] = alpha.astype(alpha_ref.dtype)


def attend_forward(A, B, w1, b1, w2, b2, *, batch_block=8):
    """Pallas version of Attend.forward (eval mode)."""
    bsz, la, e_dim = A.shape
    _, lb, _ = B.shape
    h_dim = w1.shape[1]

    # ---- lane-dense padding of E / H to 128 multiples (zeros are inert) ----
    ep = _round_up(e_dim, LANE)
    hp = _round_up(h_dim, LANE)
    A_p = jnp.pad(A, ((0, 0), (0, 0), (0, ep - e_dim)))
    B_p = jnp.pad(B, ((0, 0), (0, 0), (0, ep - e_dim)))
    w1_p = jnp.pad(w1, ((0, ep - e_dim), (0, hp - h_dim)))
    w2_p = jnp.pad(w2, ((0, hp - h_dim), (0, hp - h_dim)))
    b1_p = jnp.pad(b1, (0, hp - h_dim)).reshape(1, hp)
    b2_p = jnp.pad(b2, (0, hp - h_dim)).reshape(1, hp)

    # ---- batch blocking (pad batch to a multiple of the block) ----
    bblk = min(batch_block, bsz)
    bsz_p = _round_up(bsz, bblk)
    if bsz_p != bsz:
        A_p = jnp.pad(A_p, ((0, bsz_p - bsz), (0, 0), (0, 0)))
        B_p = jnp.pad(B_p, ((0, bsz_p - bsz), (0, 0), (0, 0)))
    grid = (bsz_p // bblk,)

    # ---- advisory cost estimate for XLA scheduling ----
    flops = (2 * bsz_p * (la + lb) * ep * hp          # x @ W1
             + 2 * bsz_p * (la + lb) * hp * hp        # h @ W2
             + 2 * bsz_p * la * lb * (2 * hp + 2 * ep))  # e, e^T, beta, alpha
    bytes_accessed = 4 * (A_p.size + B_p.size + w1_p.size + w2_p.size
                          + b1_p.size + b2_p.size
                          + bsz_p * la * ep + bsz_p * lb * ep)
    cost = pl.CostEstimate(flops=int(flops),
                           transcendentals=int(2 * bsz_p * la * lb),
                           bytes_accessed=int(bytes_accessed))

    out_shapes = (
        jax.ShapeDtypeStruct((bsz_p, la, ep), jnp.float32),   # beta (padded)
        jax.ShapeDtypeStruct((bsz_p, lb, ep), jnp.float32),   # alpha (padded)
    )

    beta_p, alpha_p = pl.pallas_call(
        attend_kernel,
        out_shape=out_shapes,
        grid=grid,
        in_specs=[
            pl.BlockSpec((bblk, la, ep), lambda i: (i, 0, 0)),   # A
            pl.BlockSpec((bblk, lb, ep), lambda i: (i, 0, 0)),   # B
            pl.BlockSpec((ep, hp), lambda i: (0, 0)),            # W1
            pl.BlockSpec((1, hp), lambda i: (0, 0)),             # b1
            pl.BlockSpec((hp, hp), lambda i: (0, 0)),            # W2
            pl.BlockSpec((1, hp), lambda i: (0, 0)),             # b2
        ],
        out_specs=(
            pl.BlockSpec((bblk, la, ep), lambda i: (i, 0, 0)),   # beta
            pl.BlockSpec((bblk, lb, ep), lambda i: (i, 0, 0)),   # alpha
        ),
        compiler_params=pltpu.CompilerParams(
            dimension_semantics=("parallel",),
            vmem_limit_bytes=64 * 1024 * 1024),
        cost_estimate=cost,
    )(A_p, B_p, w1_p, b1_p, w2_p, b2_p)

    # Strip batch / embed padding.
    return beta_p[:bsz, :, :e_dim], alpha_p[:bsz, :, :e_dim]


def attend_reference(A, B, w1, b1, w2, b2):
    """Pure-JAX reference matching the PyTorch semantics (eval mode)."""
    def f_mlp(x):
        h = jnp.maximum(x @ w1 + b1, 0.0)
        return jnp.maximum(h @ w2 + b2, 0.0)

    f_a = f_mlp(A)                                   # (bsz, La, H)
    f_b = f_mlp(B)                                   # (bsz, Lb, H)
    e = jnp.einsum('bih,bjh->bij', f_a, f_b)         # (bsz, La, Lb)
    beta = jnp.einsum('bij,bjd->bid', jax.nn.softmax(e, axis=-1), B)
    # e^T is (bsz, Lb, La); softmax over La, contract La against A.
    alpha = jnp.einsum('bij,bjd->bid',
                       jax.nn.softmax(jnp.swapaxes(e, 1, 2), axis=-1), A)
    return beta, alpha


if __name__ == "__main__":
    # Small shapes consistent with the module (original uses E=100, H=200).
    batch, seq_a, seq_b = 2, 8, 16
    embed_size, num_hiddens = 32, 32

    key = jax.random.PRNGKey(0)
    k_a, k_b, k_w1, k_b1, k_w2, k_b2 = jax.random.split(key, 6)

    A = jax.random.normal(k_a, (batch, seq_a, embed_size), dtype=jnp.float32)
    B = jax.random.normal(k_b, (batch, seq_b, embed_size), dtype=jnp.float32)

    # Linear weights stored as (in, out).
    w1 = jax.random.normal(k_w1, (embed_size, num_hiddens), jnp.float32) * 0.1
    b1 = jax.random.normal(k_b1, (num_hiddens,), jnp.float32) * 0.1
    w2 = jax.random.normal(k_w2, (num_hiddens, num_hiddens), jnp.float32) * 0.1
    b2 = jax.random.normal(k_b2, (num_hiddens,), jnp.float32) * 0.1

    beta, alpha = attend_forward(A, B, w1, b1, w2, b2)
    jax.block_until_ready((beta, alpha))

    beta_ref, alpha_ref = attend_reference(A, B, w1, b1, w2, b2)
    assert beta.shape == (batch, seq_a, embed_size)
    assert alpha.shape == (batch, seq_b, embed_size)
    # bf16 MXU operands + approx reciprocal -> loosened tolerances.
    assert jnp.allclose(beta, beta_ref, atol=2e-2, rtol=2e-2), \
        float(jnp.max(jnp.abs(beta - beta_ref)))
    assert jnp.allclose(alpha, alpha_ref, atol=2e-2, rtol=2e-2), \
        float(jnp.max(jnp.abs(alpha - alpha_ref)))

    print("KERNEL_OK")
</pallas_src>

<mosaic_0001>
module attributes {stable_mosaic.version = 11 : i64} {
  func.func @attend_kernel(%arg0: i32, %arg1: memref<2x8x128xf32, #tpu.memory_space<vmem>>, %arg2: memref<2x16x128xf32, #tpu.memory_space<vmem>>, %arg3: memref<128x128xf32, #tpu.memory_space<vmem>>, %arg4: memref<1x128xf32, #tpu.memory_space<vmem>>, %arg5: memref<128x128xf32, #tpu.memory_space<vmem>>, %arg6: memref<1x128xf32, #tpu.memory_space<vmem>>, %arg7: memref<2x8x128xf32, #tpu.memory_space<vmem>>, %arg8: memref<2x16x128xf32, #tpu.memory_space<vmem>>) attributes {dimension_semantics = [#tpu.dimension_semantics<parallel>], iteration_bounds = array<i64: 1>, scalar_prefetch = 0 : i64, scratch_operands = 0 : i64, tpu.core_type = #tpu.core_type<tc>, window_params = [{transform_indices = @transform_0, window_bounds = array<i64: 2, 8, 128>}, {transform_indices = @transform_1, window_bounds = array<i64: 2, 16, 128>}, {pipeline_mode = #tpu.pipeline_mode<synchronous>, transform_indices = @transform_2, window_bounds = array<i64: 128, 128>}, {pipeline_mode = #tpu.pipeline_mode<synchronous>, transform_indices = @transform_3, window_bounds = array<i64: 1, 128>}, {pipeline_mode = #tpu.pipeline_mode<synchronous>, transform_indices = @transform_4, window_bounds = array<i64: 128, 128>}, {pipeline_mode = #tpu.pipeline_mode<synchronous>, transform_indices = @transform_5, window_bounds = array<i64: 1, 128>}, {transform_indices = @transform_6, window_bounds = array<i64: 2, 8, 128>}, {transform_indices = @transform_7, window_bounds = array<i64: 2, 16, 128>}]} {
    %c0 = arith.constant 0 : index
    %c0_0 = arith.constant 0 : index
    %c0_1 = arith.constant 0 : index
    %0 = vector.load %arg1[%c0, %c0_0, %c0_1] : memref<2x8x128xf32, #tpu.memory_space<vmem>>, vector<2x8x128xf32>
    %c0_2 = arith.constant 0 : index
    %c0_3 = arith.constant 0 : index
    %c0_4 = arith.constant 0 : index
    %1 = vector.load %arg2[%c0_2, %c0_3, %c0_4] : memref<2x16x128xf32, #tpu.memory_space<vmem>>, vector<2x16x128xf32>
    %c0_5 = arith.constant 0 : index
    %c0_6 = arith.constant 0 : index
    %2 = vector.load %arg3[%c0_5, %c0_6] : memref<128x128xf32, #tpu.memory_space<vmem>>, vector<128x128xf32>
    %3 = arith.truncf %2 : vector<128x128xf32> to vector<128x128xbf16>
    %c0_7 = arith.constant 0 : index
    %c0_8 = arith.constant 0 : index
    %4 = vector.load %arg5[%c0_7, %c0_8] : memref<128x128xf32, #tpu.memory_space<vmem>>, vector<128x128xf32>
    %5 = arith.truncf %4 : vector<128x128xf32> to vector<128x128xbf16>
    %c0_9 = arith.constant 0 : index
    %c0_10 = arith.constant 0 : index
    %6 = vector.load %arg4[%c0_9, %c0_10] : memref<1x128xf32, #tpu.memory_space<vmem>>, vector<1x128xf32>
    %c0_11 = arith.constant 0 : index
    %c0_12 = arith.constant 0 : index
    %7 = vector.load %arg6[%c0_11, %c0_12] : memref<1x128xf32, #tpu.memory_space<vmem>>, vector<1x128xf32>
    %8 = vector.shape_cast %0 : vector<2x8x128xf32> to vector<16x128xf32>
    %9 = vector.shape_cast %1 : vector<2x16x128xf32> to vector<32x128xf32>
    %10 = tpu.concatenate %8, %9 in 0 : vector<16x128xf32>, vector<32x128xf32> -> vector<48x128xf32>
    %11 = arith.truncf %10 : vector<48x128xf32> to vector<48x128xbf16>
    %cst = arith.constant dense<0.000000e+00> : vector<48x128xf32>
    %12 = tpu.matmul %11, %3, %cst {dimension_numbers = #tpu.dot_dimension_numbers<[1], [0], [0], [1], [0, 0, 1, 1], [], []>} : vector<48x128xbf16>, vector<128x128xbf16>, vector<48x128xf32> -> vector<48x128xf32>
    %13 = vector.broadcast %6 : vector<1x128xf32> to vector<48x128xf32>
    %14 = arith.addf %12, %13 : vector<48x128xf32>
    %cst_13 = arith.constant 0.000000e+00 : f32
    %15 = vector.broadcast %cst_13 : f32 to vector<48x128xf32>
    %16 = arith.maximumf %14, %15 : vector<48x128xf32>
    %17 = arith.truncf %16 : vector<48x128xf32> to vector<48x128xbf16>
    %cst_14 = arith.constant dense<0.000000e+00> : vector<48x128xf32>
    %18 = tpu.matmul %17, %5, %cst_14 {dimension_numbers = #tpu.dot_dimension_numbers<[1], [0], [0], [1], [0, 0, 1, 1], [], []>} : vector<48x128xbf16>, vector<128x128xbf16>, vector<48x128xf32> -> vector<48x128xf32>
    %19 = vector.broadcast %7 : vector<1x128xf32> to vector<48x128xf32>
    %20 = arith.addf %18, %19 : vector<48x128xf32>
    %cst_15 = arith.constant 0.000000e+00 : f32
    %21 = vector.broadcast %cst_15 : f32 to vector<48x128xf32>
    %22 = arith.maximumf %20, %21 : vector<48x128xf32>
    %23 = vector.extract_strided_slice %22 {offsets = [0, 0], sizes = [16, 128], strides = [1, 1]} : vector<48x128xf32> to vector<16x128xf32>
    %24 = vector.shape_cast %23 : vector<16x128xf32> to vector<2x8x128xf32>
    %25 = arith.truncf %24 : vector<2x8x128xf32> to vector<2x8x128xbf16>
    %26 = vector.extract_strided_slice %22 {offsets = [16, 0], sizes = [32, 128], strides = [1, 1]} : vector<48x128xf32> to vector<32x128xf32>
    %27 = vector.shape_cast %26 : vector<32x128xf32> to vector<2x16x128xf32>
    %28 = arith.truncf %27 : vector<2x16x128xf32> to vector<2x16x128xbf16>
    %29 = arith.truncf %0 : vector<2x8x128xf32> to vector<2x8x128xbf16>
    %30 = arith.truncf %1 : vector<2x16x128xf32> to vector<2x16x128xbf16>
    "tpu.trace_start"() <{level = 10 : i32, message = "bih,bjh->bij"}> : () -> ()
    %cst_16 = arith.constant dense<0.000000e+00> : vector<2x8x16xf32>
    %31 = tpu.matmul %25, %28, %cst_16 {dimension_numbers = #tpu.dot_dimension_numbers<[2], [2], [1], [1], [0, 0, 0, 1, 1, 1], [0], [0]>} : vector<2x8x128xbf16>, vector<2x16x128xbf16>, vector<2x8x16xf32> -> vector<2x8x16xf32>
    "tpu.trace_stop"() : () -> ()
    %cst_17 = arith.constant dense<0xFF800000> : vector<2x8xf32>
    %32 = vector.multi_reduction <maximumf>, %31, %cst_17 [2] : vector<2x8x16xf32> to vector<2x8xf32>
    %33 = vector.shape_cast %32 : vector<2x8xf32> to vector<2x8x1xf32>
    %34 = vector.broadcast %33 : vector<2x8x1xf32> to vector<2x8x16xf32>
    %35 = arith.subf %31, %34 : vector<2x8x16xf32>
    %36 = math.exp %35 : vector<2x8x16xf32>
    %cst_18 = arith.constant dense<0.000000e+00> : vector<2x8xf32>
    %37 = vector.multi_reduction <add>, %36, %cst_18 [2] : vector<2x8x16xf32> to vector<2x8xf32>
    %38 = vector.shape_cast %37 : vector<2x8xf32> to vector<2x8x1xf32>
    %39 = tpu.reciprocal %38 {approx = true} : vector<2x8x1xf32> -> vector<2x8x1xf32>
    %40 = vector.broadcast %39 : vector<2x8x1xf32> to vector<2x8x16xf32>
    %41 = arith.mulf %36, %40 : vector<2x8x16xf32>
    %42 = arith.truncf %41 : vector<2x8x16xf32> to vector<2x8x16xbf16>
    "tpu.trace_start"() <{level = 10 : i32, message = "bij,bjd->bid"}> : () -> ()
    %cst_19 = arith.constant dense<0.000000e+00> : vector<2x8x128xf32>
    %43 = tpu.matmul %42, %30, %cst_19 {dimension_numbers = #tpu.dot_dimension_numbers<[2], [1], [1], [2], [0, 0, 0, 1, 1, 2], [0], [0]>} : vector<2x8x16xbf16>, vector<2x16x128xbf16>, vector<2x8x128xf32> -> vector<2x8x128xf32>
    "tpu.trace_stop"() : () -> ()
    %c0_20 = arith.constant 0 : index
    %c0_21 = arith.constant 0 : index
    %c0_22 = arith.constant 0 : index
    %44 = vector.load %arg7[%c0_20, %c0_21, %c0_22] : memref<2x8x128xf32, #tpu.memory_space<vmem>>, vector<2x8x128xf32>
    tpu.vector_store %arg7[%c0_20, %c0_21, %c0_22], %43 {strides = array<i32>} : memref<2x8x128xf32, #tpu.memory_space<vmem>>, vector<2x8x128xf32>,
    "tpu.trace_start"() <{level = 10 : i32, message = "bjh,bih->bji"}> : () -> ()
    %cst_23 = arith.constant dense<0.000000e+00> : vector<2x16x8xf32>
    %45 = tpu.matmul %28, %25, %cst_23 {dimension_numbers = #tpu.dot_dimension_numbers<[2], [2], [1], [1], [0, 0, 0, 1, 1, 1], [0], [0]>} : vector<2x16x128xbf16>, vector<2x8x128xbf16>, vector<2x16x8xf32> -> vector<2x16x8xf32>
    "tpu.trace_stop"() : () -> ()
    %cst_24 = arith.constant dense<0xFF800000> : vector<2x16xf32>
    %46 = vector.multi_reduction <maximumf>, %45, %cst_24 [2] : vector<2x16x8xf32> to vector<2x16xf32>
    %47 = vector.shape_cast %46 : vector<2x16xf32> to vector<2x16x1xf32>
    %48 = vector.broadcast %47 : vector<2x16x1xf32> to vector<2x16x8xf32>
    %49 = arith.subf %45, %48 : vector<2x16x8xf32>
    %50 = math.exp %49 : vector<2x16x8xf32>
    %cst_25 = arith.constant dense<0.000000e+00> : vector<2x16xf32>
    %51 = vector.multi_reduction <add>, %50, %cst_25 [2] : vector<2x16x8xf32> to vector<2x16xf32>
    %52 = vector.shape_cast %51 : vector<2x16xf32> to vector<2x16x1xf32>
    %53 = tpu.reciprocal %52 {approx = true} : vector<2x16x1xf32> -> vector<2x16x1xf32>
    %54 = vector.broadcast %53 : vector<2x16x1xf32> to vector<2x16x8xf32>
    %55 = arith.mulf %50, %54 : vector<2x16x8xf32>
    %56 = arith.truncf %55 : vector<2x16x8xf32> to vector<2x16x8xbf16>
    "tpu.trace_start"() <{level = 10 : i32, message = "bij,bjd->bid"}> : () -> ()
    %cst_26 = arith.constant dense<0.000000e+00> : vector<2x16x128xf32>
    %57 = tpu.matmul %56, %29, %cst_26 {dimension_numbers = #tpu.dot_dimension_numbers<[2], [1], [1], [2], [0, 0, 0, 1, 1, 2], [0], [0]>} : vector<2x16x8xbf16>, vector<2x8x128xbf16>, vector<2x16x128xf32> -> vector<2x16x128xf32>
    "tpu.trace_stop"() : () -> ()
    %c0_27 = arith.constant 0 : index
    %c0_28 = arith.constant 0 : index
    %c0_29 = arith.constant 0 : index
    %58 = vector.load %arg8[%c0_27, %c0_28, %c0_29] : memref<2x16x128xf32, #tpu.memory_space<vmem>>, vector<2x16x128xf32>
    tpu.vector_store %arg8[%c0_27, %c0_28, %c0_29], %57 {strides = array<i32>} : memref<2x16x128xf32, #tpu.memory_space<vmem>>, vector<2x16x128xf32>,
    return
  }
  func.func @transform_0(%arg0: i32) -> (i32, i32, i32) {
    %c0_i32 = arith.constant 0 : i32
    %c0_i32_0 = arith.constant 0 : i32
    %c0_i32_1 = arith.constant 0 : i32
    return %arg0, %c0_i32, %c0_i32_0 : i32, i32, i32
  }
  func.func @transform_1(%arg0: i32) -> (i32, i32, i32) {
    %c0_i32 = arith.constant 0 : i32
    %c0_i32_0 = arith.constant 0 : i32
    %c0_i32_1 = arith.constant 0 : i32
    return %arg0, %c0_i32, %c0_i32_0 : i32, i32, i32
  }
  func.func @transform_2(%arg0: i32) -> (i32, i32) {
    %c0_i32 = arith.constant 0 : i32
    %c0_i32_0 = arith.constant 0 : i32
    %c0_i32_1 = arith.constant 0 : i32
    return %c0_i32, %c0_i32_0 : i32, i32
  }
  func.func @transform_3(%arg0: i32) -> (i32, i32) {
    %c0_i32 = arith.constant 0 : i32
    %c0_i32_0 = arith.constant 0 : i32
    %c0_i32_1 = arith.constant 0 : i32
    return %c0_i32, %c0_i32_0 : i32, i32
  }
  func.func @transform_4(%arg0: i32) -> (i32, i32) {
    %c0_i32 = arith.constant 0 : i32
    %c0_i32_0 = arith.constant 0 : i32
    %c0_i32_1 = arith.constant 0 : i32
    return %c0_i32, %c0_i32_0 : i32, i32
  }
  func.func @transform_5(%arg0: i32) -> (i32, i32) {
    %c0_i32 = arith.constant 0 : i32
    %c0_i32_0 = arith.constant 0 : i32
    %c0_i32_1 = arith.constant 0 : i32
    return %c0_i32, %c0_i32_0 : i32, i32
  }
  func.func @transform_6(%arg0: i32) -> (i32, i32, i32) {
    %c0_i32 = arith.constant 0 : i32
    %c0_i32_0 = arith.constant 0 : i32
    %c0_i32_1 = arith.constant 0 : i32
    return %arg0, %c0_i32, %c0_i32_0 : i32, i32, i32
  }
  func.func @transform_7(%arg0: i32) -> (i32, i32, i32) {
    %c0_i32 = arith.constant 0 : i32
    %c0_i32_0 = arith.constant 0 : i32
    %c0_i32_1 = arith.constant 0 : i32
    return %arg0, %c0_i32, %c0_i32_0 : i32, i32, i32
  }
}

</mosaic_0001>

<bundles_post_ra>
// kernel: tpu_custom_call.1
= control target key start
LH: loop header
LB: loop body
LE: loop exit
PB: predicated region body
PF: predicated region fallthrough
CT: control target
= control target key end

     0   :  { %13 = vsyncpa [#allocation3], 0  ;;  %s1239_s0 = inlined_call_operand.hbm [shape: f32[2,8,128], index: 0, kind: input, shape index: {}]   ;;  %s1240_s1 = inlined_call_operand.hbm [shape: f32[2,16,128], index: 1, kind: input, shape index: {}]   ;;  %s1241_s2 = inlined_call_operand.hbm [shape: f32[128,128], index: 2, kind: input, shape index: {}]   ;;  %s1242_s3 = inlined_call_operand.vmem [shape: f32[1,128], index: 3, kind: input, shape index: {}]   ;;  %s1243_s4 = inlined_call_operand.hbm [shape: f32[128,128], index: 4, kind: input, shape index: {}]   ;;  %s1244_s5 = inlined_call_operand.vmem [shape: f32[1,128], index: 5, kind: input, shape index: {}]   ;;  %s1245_s6 = inlined_call_operand.hbm [shape: f32[2,8,128], index: 6, kind: output, shape index: {0}]   ;;  %s1246_s7 = inlined_call_operand.hbm [shape: f32[2,16,128], index: 7, kind: output, shape index: {1}]  }
   0x1   :  { %14 = vsyncpa [#allocation6], 0 }
   0x2   :  { %15 = vsyncpa [#allocation9], 0 }
   0x3   :  { %16 = vsyncpa [#allocation4], 0 }
   0x4   :  { %17 = vsyncpa [#allocation12], 0  ;;  %s1057_s24 = smov [#allocation5]   ;;  %s1058_s26 = smov [#allocation2]  }
   0x5   :  { %s35_s25 = sshll.u32 %s1057_s24, 4  ;;  %s23_s27 = sshll.u32 %s1058_s26, 4  ;;  %s36_s25 = int_to_ptr.vmem [resolvable:$true] %s35_s25  ;;  %s24_s27 = int_to_ptr.vmem [resolvable:$true] %s23_s27 }
   0x6   :  { %s935_s28 = scalar_lea.vmem %s36_s25, 512  ;;  %p940_p1 = scmp.lt.s32.totalorder %s36_s25, %s36_s25 }
   0x7   :  { %p936_p0 = scmp.ne.s32.totalorder %s36_s25, %s935_s28  ;;  %p941_p2 = scmp.lt.s32.totalorder %s935_s28, %s935_s28 }
   0x9   :  { %p942_p3 = por %p941_p2, %p940_p1 }
   0xb   :  { %p943_p4 = pnand %p942_p3, %p936_p0 }
   0xd   :  { %946 = shalt.err (!%p943_p4)
}
   0xe   :  { %s1059_s29 = smov 128   ;;  %s1060_s30 = smov 8  }
   0xf   :  { %41 = dma.hbm_to_vmem [thread:$0]  %s1240_s1, 512, %s36_s25, [#allocation6], %s1059_s29, %s1059_s29, %s1060_s30  }
  0x10   :  { %s955_s10 = scalar_lea.vmem %s24_s27, 256  ;;  %p960_p6 = scmp.lt.s32.totalorder %s24_s27, %s24_s27 }
  0x11   :  { %p956_p5 = scmp.ne.s32.totalorder %s24_s27, %s955_s10  ;;  %p961_p7 = scmp.lt.s32.totalorder %s955_s10, %s955_s10 }
  0x13   :  { %p962_p8 = por %p961_p7, %p960_p6 }
  0x15   :  { %p963_p9 = pnand %p962_p8, %p956_p5 }
  0x17   :  { %966 = shalt.err (!%p963_p9)
}
  0x18   :  { %29 = dma.hbm_to_vmem [thread:$0]  %s1239_s0, 256, %s24_s27, [#allocation3], %s1059_s29, %s1059_s29, %s1060_s30  }
  0x19   :  { %s1061_s13 = smov [#allocation7]   ;;  %s1062_s15 = smov [#allocation8]  }
  0x1a   :  { %s47_s14 = sshll.u32 %s1061_s13, 4  ;;  %s61_s16 = sshll.u32 %s1062_s15, 4  ;;  %s48_s14 = int_to_ptr.vmem [resolvable:$true] %s47_s14  ;;  %s62_s16 = int_to_ptr.vmem [resolvable:$true] %s61_s16 }
  0x1b   :  { %s975_s1 = scalar_lea.vmem %s48_s14, 2048  ;;  %p980_p11 = scmp.lt.s32.totalorder %s48_s14, %s48_s14 }
  0x1c   :  { %p976_p10 = scmp.ne.s32.totalorder %s48_s14, %s975_s1  ;;  %p981_p12 = scmp.lt.s32.totalorder %s975_s1, %s975_s1 }
  0x1e   :  { %p982_p13 = por %p981_p12, %p980_p11 }
  0x20   :  { %p983_p0 = pnand %p982_p13, %p976_p10 }
  0x22   :  { %986 = shalt.err (!%p983_p0)
}
  0x23   :  { %53 = dma.hbm_to_vmem [thread:$0]  %s1241_s2, 2048, %s48_s14, [#allocation6], %s1059_s29, %s1059_s29, %s1060_s30  }
  0x24   :  { %s995_s0 = scalar_lea.vmem %s62_s16, 2048  ;;  %p1000_p2 = scmp.lt.s32.totalorder %s62_s16, %s62_s16 }
  0x25   :  { %p996_p1 = scmp.ne.s32.totalorder %s62_s16, %s995_s0  ;;  %p1001_p3 = scmp.lt.s32.totalorder %s995_s0, %s995_s0 }
  0x27   :  { %p1002_p4 = por %p1001_p3, %p1000_p2 }
  0x29   :  { %p1003_p5 = pnand %p1002_p4, %p996_p1 }
  0x2b   :  { %1006 = shalt.err (!%p1003_p5)
}
  0x2c   :  { %67 = dma.hbm_to_vmem [thread:$0]  %s1243_s4, 2048, %s62_s16, [#allocation9], %s1059_s29, %s1059_s29, %s1060_s30  }
  0x2d   :  { %1047 = dma.done.wait [#allocation3], 256  }
  0x2e   :  { %1048 = vsyncadd [#allocation3], 4294967040 }
  0x2f   :  { %1049 = dma.done.wait [#allocation6], 2560  }
  0x30   :  { %1050 = vsyncadd [#allocation6], 4294964736 }
  0x31   :  { %1051 = dma.done.wait [#allocation9], 2048  }
  0x32   :  { %1052 = vsyncadd [#allocation9], 4294965248  ;;  %v1063_v0 = vmov 0.0   ;;  %vm1064_vm0 = vmmov 0   ;;  %v103_v1 = vld [vmem:[#allocation7 + $0x70] sm:$0xff]  ;;  %v104_v2 = vld [vmem:[#allocation7 + $0x78] sm:$0xff] }
  0x33   :  { %789 = vmatprep.subr.bf16.mxu0 %v1063_v0  ;;  %805 = vmatprep.mubr.msk.bf16.mxu0 %vm1064_vm0, %v1063_v0  ;;  %v101_v3 = vld [vmem:[#allocation7 + $0x60] sm:$0xff]  ;;  %v112_v4 = vpack.c.bf16 %v104_v2, %v103_v1  ;;  %v102_v5 = vld [vmem:[#allocation7 + $0x68] sm:$0xff]  ;;  %v99_v7 = vld [vmem:[#allocation7 + $0x50] sm:$0xff]  ;;  %vm369_vm1 = vcmask 130048   ;;  %vm564_vm2 = vcmask 64512   ;;  %vm614_vm3 = vcmask 1043456  }
  0x34   :  { %817 = vmatprep.subr.bf16.mxu1 %v1063_v0  ;;  %833 = vmatprep.mubr.msk.bf16.mxu1 %vm1064_vm0, %v1063_v0  ;;  %v111_v6 = vpack.c.bf16 %v102_v5, %v101_v3  ;;  %v100_v8 = vld [vmem:[#allocation7 + $0x58] sm:$0xff]  ;;  %v97_v10 = vld [vmem:[#allocation7 + $0x40] sm:$0xff]  ;;  %v127_v11 = vld [vmem:[#allocation8 + $0x70] sm:$0xff] }
  0x35   :  { %790 = vmatpush3.bf16.msra.mxu0 %v112_v4  ;;  %v110_v9 = vpack.c.bf16 %v100_v8, %v99_v7  ;;  %v128_v12 = vld [vmem:[#allocation8 + $0x78] sm:$0xff]  ;;  %v98_v13 = vld [vmem:[#allocation7 + $0x48] sm:$0xff]  ;;  %v125_v15 = vld [vmem:[#allocation8 + $0x60] sm:$0xff] }
  0x36   :  { %791 = vmatprep.subr.bf16.mxu0 %v1063_v0  ;;  %v136_v14 = vpack.c.bf16 %v128_v12, %v127_v11  ;;  %v126_v16 = vld [vmem:[#allocation8 + $0x68] sm:$0xff]  ;;  %v109_v18 = vpack.c.bf16 %v98_v13, %v97_v10  ;;  %v123_v19 = vld [vmem:[#allocation8 + $0x50] sm:$0xff]  ;;  %v124_v20 = vld [vmem:[#allocation8 + $0x58] sm:$0xff] }
  0x37   :  { %v135_v17 = vpack.c.bf16 %v126_v16, %v125_v15  ;;  %v95_v21 = vld [vmem:[#allocation7 + $0x30] sm:$0xff]  ;;  %v96_v22 = vld [vmem:[#allocation7 + $0x38] sm:$0xff]  ;;  %v134_v23 = vpack.c.bf16 %v124_v20, %v123_v19  ;;  %v121_v25 = vld [vmem:[#allocation8 + $0x40] sm:$0xff] }
  0x38   :  { %818 = vmatpush3.bf16.msra.mxu1 %v136_v14  ;;  %v108_v24 = vpack.c.bf16 %v96_v22, %v95_v21  ;;  %v122_v26 = vld [vmem:[#allocation8 + $0x48] sm:$0xff]  ;;  %v93_v27 = vld [vmem:[#allocation7 + $0x20] sm:$0xff]  ;;  %v119_v31 = vld [vmem:[#allocation8 + $0x30] sm:$0xff] }
  0x39   :  { %792 = vmatpush3.bf16.msra.mxu0 %v111_v6  ;;  %819 = vmatprep.subr.bf16.mxu1 %v1063_v0  ;;  %v94_v28 = vld [vmem:[#allocation7 + $0x28] sm:$0xff]  ;;  %v133_v29 = vpack.c.bf16 %v122_v26, %v121_v25  ;;  %v120_v32 = vld [vmem:[#allocation8 + $0x38] sm:$0xff]  ;;  %v91_v33 = vld [vmem:[#allocation7 + $0x10] sm:$0xff] }
  0x3a   :  { %793 = vmatprep.subr.bf16.mxu0 %v1063_v0  ;;  %v107_v30 = vpack.c.bf16 %v94_v28, %v93_v27  ;;  %v92_v34 = vld [vmem:[#allocation7 + $0x18] sm:$0xff]  ;;  %v132_v35 = vpack.c.bf16 %v120_v32, %v119_v31  ;;  %v89_v37 = vld [vmem:[#allocation7] sm:$0xff]  ;;  %v90_v38 = vld [vmem:[#allocation7 + $0x8] sm:$0xff] }
  0x3b   :  { %v106_v36 = vpack.c.bf16 %v92_v34, %v91_v33  ;;  %v105_v39 = vpack.c.bf16 %v90_v38, %v89_v37  ;;  %v1147_v40 = vld [vmem:[#allocation2] sm:$0xff]  ;;  %v1149_v41 = vld [vmem:[#allocation2 + $0x8] sm:$0xff]  ;;  %v85_v43 = vld [vmem:[#allocation5] sm:$0xff] }
  0x3c   :  { %820 = vmatpush3.bf16.msra.mxu1 %v135_v17  ;;  %v139_v42 = vpack.c.bf16 %v1149_v41, %v1147_v40  ;;  %v86_v44 = vld [vmem:[#allocation5 + $0x8] sm:$0xff]  ;;  %v87_v46 = vld [vmem:[#allocation5 + $0x10] sm:$0xff]  ;;  %v88_v47 = vld [vmem:[#allocation5 + $0x18] sm:$0xff] }
  0x3d   :  { %794 = vmatpush3.bf16.msra.mxu0 %v110_v9  ;;  %821 = vmatprep.subr.bf16.mxu1 %v1063_v0  ;;  %v1158_v45 = vpack.c.bf16 %v86_v44, %v85_v43  ;;  %v1163_v48 = vpack.c.bf16 %v88_v47, %v87_v46  ;;  %v117_v49 = vld [vmem:[#allocation8 + $0x20] sm:$0xff]  ;;  %v118_v50 = vld [vmem:[#allocation8 + $0x28] sm:$0xff]  ;;  %v115_v52 = vld [vmem:[#allocation8 + $0x10] sm:$0xff] }
  0x3e   :  { %795 = vmatprep.subr.bf16.mxu0 %v1063_v0  ;;  %v131_v51 = vpack.c.bf16 %v118_v50, %v117_v49  ;;  %v116_v53 = vld [vmem:[#allocation8 + $0x18] sm:$0xff]  ;;  %v113_v55 = vld [vmem:[#allocation8] sm:$0xff]  ;;  %v114_v56 = vld [vmem:[#allocation8 + $0x8] sm:$0xff] }
  0x3f   :  { %v130_v54 = vpack.c.bf16 %v116_v53, %v115_v52  ;;  %v129_v57 = vpack.c.bf16 %v114_v56, %v113_v55  ;;  %v745_v58 = vld [vmem:[%s1242_s3] ss:$0 sm:$0xff] }
  0x40   :  { %822 = vmatpush3.bf16.msra.mxu1 %v134_v23  ;;  %v746_v28 = vld [vmem:[%s1244_s5] ss:$0 sm:$0xff]  ;;  %s1065_s5 = smov [#allocation10]  }
  0x41   :  { %796 = vmatpush3.bf16.msra.mxu0 %v109_v18  ;;  %823 = vmatprep.subr.bf16.mxu1 %v1063_v0  ;;  %s715_s22 = sshll.u32 %s1065_s5, 4  ;;  %s716_s22 = int_to_ptr.vmem [resolvable:$true] %s715_s22 }
  0x42   :  { %797 = vmatprep.subr.bf16.mxu0 %v1063_v0  ;;  %s1007_s23 = scalar_lea.vmem %s716_s22, 256  ;;  %p1012_p7 = scmp.lt.s32.totalorder %s716_s22, %s716_s22 }
  0x43   :  { %p1008_p6 = scmp.ne.s32.totalorder %s716_s22, %s1007_s23  ;;  %p1013_p8 = scmp.lt.s32.totalorder %s1007_s23, %s1007_s23 }
  0x44   :  { %824 = vmatpush3.bf16.msra.mxu1 %v133_v29 }
  0x45   :  { %798 = vmatpush3.bf16.msra.mxu0 %v108_v24  ;;  %825 = vmatprep.subr.bf16.mxu1 %v1063_v0  ;;  %p1014_p9 = por %p1013_p8, %p1012_p7 }
  0x46   :  { %799 = vmatprep.subr.bf16.mxu0 %v1063_v0 }
  0x47   :  { %p1015_p10 = pnand %p1014_p9, %p1008_p6 }
  0x48   :  { %826 = vmatpush3.bf16.msra.mxu1 %v132_v35 }
  0x49   :  { %800 = vmatpush3.bf16.msra.mxu0 %v107_v30  ;;  %827 = vmatprep.subr.bf16.mxu1 %v1063_v0 }
  0x4a   :  { %801 = vmatprep.subr.bf16.mxu0 %v1063_v0 }
  0x4c   :  { %828 = vmatpush3.bf16.msra.mxu1 %v131_v51 }
  0x4d   :  { %802 = vmatpush3.bf16.msra.mxu0 %v106_v36  ;;  %829 = vmatprep.subr.bf16.mxu1 %v1063_v0 }
  0x4e   :  { %803 = vmatprep.subr.bf16.mxu0 %v1063_v0 }
  0x50   :  { %830 = vmatpush3.bf16.msra.mxu1 %v130_v54 }
  0x51   :  { %804 = vmatpush3.bf16.msra.mxu0 %v105_v39  ;;  %831 = vmatprep.subr.bf16.mxu1 %v1063_v0 }
  0x52   :  { %845 = vmatprep.subr.bf16.mxu0 %v1063_v0 }
  0x54   :  { %806 = vmatmul.mubr.bf16.vlgmr.msra.gmra.mxu0 %v139_v42  ;;  %832 = vmatpush3.bf16.msra.mxu1 %v129_v57 }
  0x55   :  { %809 = vmatprep.mubr.msk.bf16.mxu0 %vm1064_vm0, %v1063_v0  ;;  %851 = vmatprep.subr.bf16.mxu1 %v1063_v0 }
  0x5c   :  { %810 = vmatmul.mubr.bf16.gmra.mxu0 %v1158_v45 }
  0x5d   :  { %813 = vmatprep.mubr.msk.bf16.mxu0 %vm1064_vm0, %v1063_v0 }
  0x64   :  { %814 = vmatmul.mubr.bf16.gmra.mxu0 %v1163_v48 }
  0x65   :  { %847 = vmatprep.mubr.msk.bf16.mxu0 %vm1064_vm0, %v1063_v0 }
 0x114   :  { %v182_v59 = vpop.f32.mrf.mxu0 }
 0x115   :  { %v183_v61 = vadd.f32 %v745_v58, %v182_v59 }
 0x116   :  { %v807_v60 = vpop.f32.mrf.mxu0 }
 0x117   :  { %v205_v2 = vmax.f32 %v183_v61, 0.0 }
 0x118   :  { %v185_v62 = vpop.f32.mrf.mxu0 }
 0x119   :  { %v186_v63 = vadd.f32 %v745_v58, %v185_v62 }
 0x11a   :  { %v808_v1 = vpop.f32.mrf.mxu0 }
 0x11b   :  { %v206_v3 = vmax.f32 %v186_v63, 0.0 }
 0x11c   :  { %v190_v4 = vpop.f32.mrf.mxu0 }
 0x11d   :  { %v211_v5 = vpack.c.bf16 %v206_v3, %v205_v2  ;;  %v191_v7 = vadd.f32 %v745_v58, %v190_v4 }
 0x11e   :  { %v811_v6 = vpop.f32.mrf.mxu0 }
 0x11f   :  { %834 = vmatmul.mubr.bf16.vlgmr.msra.gmra.mxu1 %v211_v5  ;;  %v207_v11 = vmax.f32 %v191_v7, 0.0 }
 0x120   :  { %v193_v8 = vpop.f32.mrf.mxu0  ;;  %837 = vmatprep.mubr.msk.bf16.mxu1 %vm1064_vm0, %v1063_v0 }
 0x121   :  { %v194_v9 = vadd.f32 %v745_v58, %v193_v8 }
 0x122   :  { %v812_v10 = vpop.f32.mrf.mxu0 }
 0x123   :  { %v208_v12 = vmax.f32 %v194_v9, 0.0 }
 0x124   :  { %v198_v13 = vpop.f32.mrf.mxu0 }
 0x125   :  { %v212_v14 = vpack.c.bf16 %v208_v12, %v207_v11  ;;  %v199_v16 = vadd.f32 %v745_v58, %v198_v13 }
 0x126   :  { %v815_v15 = vpop.f32.mrf.mxu0 }
 0x127   :  { %838 = vmatmul.mubr.bf16.gmra.mxu1 %v212_v14  ;;  %v209_v20 = vmax.f32 %v199_v16, 0.0 }
 0x128   :  { %v201_v17 = vpop.f32.mrf.mxu0  ;;  %841 = vmatprep.mubr.msk.bf16.mxu1 %vm1064_vm0, %v1063_v0 }
 0x129   :  { %v202_v18 = vadd.f32 %v745_v58, %v201_v17 }
 0x12a   :  { %v816_v19 = vpop.f32.mrf.mxu0 }
 0x12b   :  { %v210_v21 = vmax.f32 %v202_v18, 0.0 }
 0x12d   :  { %v213_v22 = vpack.c.bf16 %v210_v21, %v209_v20 }
 0x12f   :  { %842 = vmatmul.mubr.bf16.gmra.mxu1 %v213_v22 }
 0x130   :  { %853 = vmatprep.mubr.msk.bf16.mxu1 %vm1064_vm0, %v1063_v0 }
 0x1df   :  { %v254_v23 = vpop.f32.mrf.mxu1 }
 0x1e0   :  { %v255_v36 = vadd.f32 %v746_v28, %v254_v23 }
 0x1e1   :  { %v835_v24 = vpop.f32.mrf.mxu1 }
 0x1e2   :  { %v277_v43 = vmax.f32 %v255_v36, 0.0 }
 0x1e3   :  { %v257_v25 = vpop.f32.mrf.mxu1 }
 0x1e4   :  { %v283_v51 = vpack.c.bf16 %v277_v43, %v277_v43  ;;  %v258_v52 = vadd.f32 %v746_v28, %v257_v25 }
 0x1e5   :  { %v836_v26 = vpop.f32.mrf.mxu1 }
 0x1e6   :  { %v278_v54 = vmax.f32 %v258_v52, 0.0 }
 0x1e7   :  { %v262_v27 = vpop.f32.mrf.mxu1 }
 0x1e8   :  { %v263_v30 = vadd.f32 %v746_v28, %v262_v27  ;;  %v284_v55 = vpack.c.bf16 %v278_v54, %v278_v54 }
 0x1e9   :  { %v839_v29 = vpop.f32.mrf.mxu1 }
 0x1ea   :  { %v279_v34 = vmax.f32 %v263_v30, 0.0 }
 0x1eb   :  { %v265_v31 = vpop.f32.mrf.mxu1 }
 0x1ec   :  { %v266_v32 = vadd.f32 %v746_v28, %v265_v31 }
 0x1ed   :  { %v840_v33 = vpop.f32.mrf.mxu1 }
 0x1ee   :  { %v280_v35 = vmax.f32 %v266_v32, 0.0 }
 0x1ef   :  { %v270_v37 = vpop.f32.mrf.mxu1 }
 0x1f0   :  { %v1183_v38 = vpack.c.bf16 %v280_v35, %v279_v34  ;;  %v271_v42 = vadd.f32 %v746_v28, %v270_v37 }
 0x1f1   :  { %v843_v39 = vpop.f32.mrf.mxu1 }
 0x1f2   :  { %846 = vmatpush3.bf16.xpose.msra.mxu0 %v1183_v38  ;;  %v281_v49 = vmax.f32 %v271_v42, 0.0 }
 0x1f3   :  { %v273_v44 = vpop.f32.mrf.mxu1  ;;  %857 = vmatprep.subr.bf16.mxu0 %v1063_v0 }
 0x1f4   :  { %v274_v46 = vadd.f32 %v746_v28, %v273_v44 }
 0x1f5   :  { %v844_v47 = vpop.f32.mrf.mxu1 }
 0x1f6   :  { %v282_v50 = vmax.f32 %v274_v46, 0.0 }
 0x1f8   :  { %v286_v53 = vpack.c.bf16 %v282_v50, %v281_v49 }
 0x1f9   :  { %848 = vmatmul.mubr.bf16.vlgmr.msra.gmra.mxu0 %v283_v51 }
 0x1fa   :  { %852 = vmatpush3.bf16.xpose.msra.mxu1 %v286_v53  ;;  %858 = vmatpush3.bf16.msra.mxu0 %v1158_v45 }
 0x1fb   :  { %859 = vmatprep.mubr.msk.bf16.mxu0 %vm1064_vm0, %v1063_v0  ;;  %869 = vmatprep.subr.bf16.mxu0 %v1063_v0 }
 0x1fc   :  { %863 = vmatprep.subr.bf16.mxu1 %v1063_v0 }
 0x201   :  { %854 = vmatmul.mubr.bf16.vlgmr.msra.gmra.mxu1 %v284_v55 }
 0x202   :  { %864 = vmatpush3.bf16.msra.mxu1 %v1163_v48  ;;  %865 = vmatprep.mubr.msk.bf16.mxu1 %vm1064_vm0, %v1063_v0 }
 0x203   :  { %875 = vmatprep.subr.bf16.mxu1 %v1063_v0 }
 0x2b9   :  { %v323_v56 = vpop.f32.mrf.mxu0 }
 0x2ba   :  { %v370_v45 = vsel %vm369_vm1, %v323_v56, -inf }
 0x2bb   :  { %371 = vmax.xlane.f32.xlu0 %v370_v45  ;;  %v849_v57 = vpop.f32.mrf.mxu0 }
 0x2bd   :  { %v326_v58 = vpop.f32.mrf.mxu0 }
 0x2bf   :  { %v850_v59 = vpop.f32.mrf.mxu0 }
 0x2c1   :  { %v363_v60 = vpop.f32.mrf.mxu1 }
 0x2c2   :  { %v373_v61 = vsel %vm369_vm1, %v363_v60, -inf }
 0x2c3   :  { %v855_v62 = vpop.f32.mrf.mxu1  ;;  %374 = vmax.xlane.f32.xlu0 %v373_v61  ;;  %v287_v61 = vpack.c.bf16 %v1147_v40, %v1147_v40 }
 0x2c5   :  { %v366_v63 = vpop.f32.mrf.mxu1  ;;  %v616_v62 = vsel %vm614_vm3, %v287_v61, 0 }
 0x2c6   :  { %v288_v63 = vpack.c.bf16 %v1149_v41, %v1149_v41 }
 0x2c7   :  { %v856_v48 = vpop.f32.mrf.mxu1 }
 0x2c8   :  { %v663_v48 = vsel %vm614_vm3, %v288_v63, 0 }
 0x344   :  { %v372_v1 = vpop.xlane.xlu0 %371 }
 0x345   :  { %v376_v2 = vsub.f32 %v323_v56, %v372_v1 }
 0x347   :  { %v378_v3 = vmul.f32 1.442695, %v376_v2 }
 0x349   :  { %903 = vpow2.f32 %v378_v3 }
 0x34c   :  { %v375_v4 = vpop.xlane.xlu0 %374 }
 0x34d   :  { %v377_v5 = vsub.f32 %v363_v60, %v375_v4 }
 0x34f   :  { %v380_v6 = vmul.f32 1.442695, %v377_v5 }
 0x351   :  { %905 = vpow2.f32 %v380_v6 }
 0x356   :  { %v904_v7 = vpop.eup %903 }
 0x357   :  { %v382_v8 = vsel %vm369_vm1, %v904_v7, 0.0 }
 0x358   :  { %383 = vadd.xlane.f32.xlu1 %v382_v8 }
 0x35e   :  { %v906_v9 = vpop.eup %905 }
 0x35f   :  { %v385_v10 = vsel %vm369_vm1, %v906_v9, 0.0 }
 0x360   :  { %386 = vadd.xlane.f32.xlu1 %v385_v10 }
 0x3e1   :  { %v384_v11 = vpop.xlane.xlu1 %383 }
 0x3e2   :  { %907 = vrcp.f32 %v384_v11 }
 0x3e9   :  { %v387_v12 = vpop.xlane.xlu1 %386 }
 0x3ea   :  { %909 = vrcp.f32 %v387_v12 }
 0x3ef   :  { %v908_v13 = vpop.eup %907 }
 0x3f0   :  { %v390_v14 = vmul.f32 %v908_v13, %v904_v7 }
 0x3f2   :  { %v392_v15 = vpack.c.bf16 %v390_v14, %v390_v14 }
 0x3f4   :  { %860 = vmatmul.mubr.msk.bf16.vlgmr.msra.gmra.mxu0 %vm369_vm1, %v392_v15 }
 0x3f5   :  { %870 = vmatpush3.bf16.xpose.msra.mxu0 %v283_v51  ;;  %871 = vmatprep.mubr.msk.bf16.mxu0 %vm1064_vm0, %v1063_v0 }
 0x3f6   :  { %881 = vmatprep.subr.bf16.mxu0 %v1063_v0 }
 0x3f7   :  { %v910_v16 = vpop.eup %909 }
 0x3f8   :  { %v391_v17 = vmul.f32 %v910_v16, %v906_v9 }
 0x3fa   :  { %v393_v18 = vpack.c.bf16 %v391_v17, %v391_v17 }
 0x3fc   :  { %866 = vmatmul.mubr.msk.bf16.vlgmr.msra.gmra.mxu1 %vm369_vm1, %v393_v18  ;;  %872 = vmatmul.mubr.bf16.vlgmr.msra.gmra.mxu0 %v1183_v38 }
 0x3fd   :  { %876 = vmatpush3.bf16.xpose.msra.mxu1 %v284_v55  ;;  %877 = vmatprep.mubr.msk.bf16.mxu1 %vm1064_vm0, %v1063_v0 }
 0x3fe   :  { %883 = vmatprep.mubr.msk.bf16.mxu0 %vm1064_vm0, %v1063_v0  ;;  %887 = vmatprep.subr.bf16.mxu1 %v1063_v0 }
 0x3ff   :  { %882 = vmatpush3.bf16.msra.mxu0 %v616_v62 }
 0x404   :  { %878 = vmatmul.mubr.bf16.vlgmr.msra.gmra.mxu1 %v286_v53 }
 0x405   :  { %889 = vmatprep.mubr.msk.bf16.mxu1 %vm1064_vm0, %v1063_v0  ;;  %888 = vmatpush3.bf16.msra.mxu1 %v663_v48 }
 0x4b4   :  { %v431_v19 = vpop.f32.mrf.mxu0 }
 0x4b5   :  { %480 = vst [vmem:[#allocation10] sm:$0xff] %v431_v19 }
 0x4b6   :  { %v861_v20 = vpop.f32.mrf.mxu0 }
 0x4b8   :  { %v434_v21 = vpop.f32.mrf.mxu0 }
 0x4ba   :  { %v862_v22 = vpop.f32.mrf.mxu0 }
 0x4bc   :  { %v474_v23 = vpop.f32.mrf.mxu1  ;;  %v516_v24 = vpop.f32.mrf.mxu0 }
 0x4bd   :  { %481 = vst [vmem:[#allocation10 + $0x8] sm:$0xff] %v474_v23  ;;  %v565_v25 = vsel %vm564_vm2, %v516_v24, -inf }
 0x4be   :  { %v867_v26 = vpop.f32.mrf.mxu1  ;;  %566 = vmax.xlane.f32.xlu0 %v565_v25  ;;  %v873_v27 = vpop.f32.mrf.mxu0 }
 0x4c0   :  { %v477_v28 = vpop.f32.mrf.mxu1  ;;  %v519_v29 = vpop.f32.mrf.mxu0 }
 0x4c1   :  { %v568_v30 = vsel %vm564_vm2, %v519_v29, -inf }
 0x4c2   :  { %v868_v31 = vpop.f32.mrf.mxu1  ;;  %569 = vmax.xlane.f32.xlu1 %v568_v30  ;;  %v874_v0 = vpop.f32.mrf.mxu0 }
 0x4c4   :  { %v557_v32 = vpop.f32.mrf.mxu1 }
 0x4c5   :  { %v571_v33 = vsel %vm564_vm2, %v557_v32, -inf }
 0x4c6   :  { %v879_v34 = vpop.f32.mrf.mxu1  ;;  %572 = vmax.xlane.f32.xlu0 %v571_v33 }
 0x4c8   :  { %v560_v35 = vpop.f32.mrf.mxu1 }
 0x4c9   :  { %v574_v36 = vsel %vm564_vm2, %v560_v35, -inf }
 0x4ca   :  { %v880_v37 = vpop.f32.mrf.mxu1  ;;  %575 = vmax.xlane.f32.xlu1 %v574_v36 }
 0x547   :  { %v567_v38 = vpop.xlane.xlu0 %566 }
 0x548   :  { %v577_v39 = vsub.f32 %v516_v24, %v567_v38 }
 0x54a   :  { %v581_v42 = vmul.f32 1.442695, %v577_v39 }
 0x54b   :  { %v570_v43 = vpop.xlane.xlu1 %569 }
 0x54c   :  { %911 = vpow2.f32 %v581_v42  ;;  %v578_v44 = vsub.f32 %v519_v29, %v570_v43 }
 0x54e   :  { %v583_v46 = vmul.f32 1.442695, %v578_v44 }
 0x54f   :  { %v573_v47 = vpop.xlane.xlu0 %572 }
 0x550   :  { %913 = vpow2.f32 %v583_v46  ;;  %v579_v49 = vsub.f32 %v557_v32, %v573_v47 }
 0x552   :  { %v585_v50 = vmul.f32 1.442695, %v579_v49 }
 0x553   :  { %v576_v51 = vpop.xlane.xlu1 %575 }
 0x554   :  { %915 = vpow2.f32 %v585_v50  ;;  %v580_v52 = vsub.f32 %v560_v35, %v576_v51 }
 0x556   :  { %v587_v53 = vmul.f32 1.442695, %v580_v52 }
 0x558   :  { %917 = vpow2.f32 %v587_v53 }
 0x559   :  { %v912_v54 = vpop.eup %911 }
 0x55a   :  { %v589_v55 = vsel %vm564_vm2, %v912_v54, 0.0 }
 0x55b   :  { %590 = vadd.xlane.f32.xlu0 %v589_v55 }
 0x55d   :  { %v914_v56 = vpop.eup %913 }
 0x55e   :  { %v592_v45 = vsel %vm564_vm2, %v914_v56, 0.0 }
 0x55f   :  { %593 = vadd.xlane.f32.xlu1 %v592_v45 }
 0x561   :  { %v916_v57 = vpop.eup %915 }
 0x562   :  { %v595_v58 = vsel %vm564_vm2, %v916_v57, 0.0 }
 0x563   :  { %596 = vadd.xlane.f32.xlu0 %v595_v58 }
 0x565   :  { %v918_v59 = vpop.eup %917 }
 0x566   :  { %v598_v60 = vsel %vm564_vm2, %v918_v59, 0.0 }
 0x567   :  { %599 = vadd.xlane.f32.xlu1 %v598_v60 }
 0x5e4   :  { %v591_v1 = vpop.xlane.xlu0 %590 }
 0x5e5   :  { %919 = vrcp.f32 %v591_v1 }
 0x5e8   :  { %v594_v2 = vpop.xlane.xlu1 %593 }
 0x5e9   :  { %921 = vrcp.f32 %v594_v2 }
 0x5ec   :  { %v597_v3 = vpop.xlane.xlu0 %596 }
 0x5ed   :  { %923 = vrcp.f32 %v597_v3 }
 0x5f0   :  { %v600_v4 = vpop.xlane.xlu1 %599 }
 0x5f1   :  { %925 = vrcp.f32 %v600_v4 }
 0x5f2   :  { %v920_v5 = vpop.eup %919 }
 0x5f3   :  { %v605_v7 = vmul.f32 %v920_v5, %v912_v54 }
 0x5f6   :  { %v922_v6 = vpop.eup %921 }
 0x5f7   :  { %v606_v40 = vmul.f32 %v922_v6, %v914_v56 }
 0x5f9   :  { %v609_v8 = vpack.c.bf16 %v606_v40, %v605_v7 }
 0x5fa   :  { %v924_v9 = vpop.eup %923 }
 0x5fb   :  { %884 = vmatmul.mubr.msk.bf16.vlgmr.msra.gmra.mxu0 %vm564_vm2, %v609_v8  ;;  %v607_v41 = vmul.f32 %v924_v9, %v916_v57 }
 0x5fe   :  { %v926_v10 = vpop.eup %925 }
 0x5ff   :  { %v608_v11 = vmul.f32 %v926_v10, %v918_v59 }
 0x601   :  { %v610_v12 = vpack.c.bf16 %v608_v11, %v607_v41 }
 0x603   :  { %890 = vmatmul.mubr.msk.bf16.vlgmr.msra.gmra.mxu1 %vm564_vm2, %v610_v12 }
 0x604   :  { %1018 = shalt.err (!%p1015_p10)
}
 0x605   :  { %721 = dma.vmem_to_hbm [thread:$0]  %s716_s22, 256, %s1245_s6, [#allocation4], %s1059_s29, %s1059_s29, %s1060_s30  }
 0x606   :  { %s1066_s26 = smov [#allocation11]  }
 0x607   :  { %s727_s27 = sshll.u32 %s1066_s26, 4  ;;  %s728_s27 = int_to_ptr.vmem [resolvable:$true] %s727_s27 }
 0x608   :  { %s1027_s28 = scalar_lea.vmem %s728_s27, 512  ;;  %p1032_p12 = scmp.lt.s32.totalorder %s728_s27, %s728_s27 }
 0x609   :  { %p1028_p11 = scmp.ne.s32.totalorder %s728_s27, %s1027_s28  ;;  %p1033_p13 = scmp.lt.s32.totalorder %s1027_s28, %s1027_s28 }
 0x60b   :  { %p1034_p0 = por %p1033_p13, %p1032_p12 }
 0x60d   :  { %p1035_p1 = pnand %p1034_p0, %p1028_p11 }
 0x6bb   :  { %v652_v13 = vpop.f32.mrf.mxu0 }
 0x6bc   :  { %706 = vst [vmem:[#allocation11] sm:$0xff] %v652_v13 }
 0x6bd   :  { %v885_v14 = vpop.f32.mrf.mxu0 }
 0x6bf   :  { %v655_v15 = vpop.f32.mrf.mxu0 }
 0x6c0   :  { %707 = vst [vmem:[#allocation11 + $0x8] sm:$0xff] %v655_v15 }
 0x6c1   :  { %v886_v16 = vpop.f32.mrf.mxu0 }
 0x6c3   :  { %v699_v17 = vpop.f32.mrf.mxu1 }
 0x6c4   :  { %708 = vst [vmem:[#allocation11 + $0x10] sm:$0xff] %v699_v17 }
 0x6c5   :  { %v891_v18 = vpop.f32.mrf.mxu1 }
 0x6c7   :  { %v702_v19 = vpop.f32.mrf.mxu1 }
 0x6c8   :  { %709 = vst [vmem:[#allocation11 + $0x18] sm:$0xff] %v702_v19 }
 0x6c9   :  { %v892_v20 = vpop.f32.mrf.mxu1 }
 0x6ca   :  { %1038 = shalt.err (!%p1035_p1)
}
 0x6cb   :  { %733 = dma.vmem_to_hbm [thread:$0]  %s728_s27, 512, %s1246_s7, [#allocation12], %s1059_s29, %s1059_s29, %s1060_s30  }
 0x6cc   :  { %1053 = dma.done.wait [#allocation4], 256  }
 0x6cd   :  { %1054 = vsyncadd [#allocation4], 4294967040 }
 0x6ce   :  { %1055 = dma.done.wait [#allocation12], 512  }
 0x6cf   :  { %1056 = vsyncadd [#allocation12], 4294966784 }
 0x6d0   :  { %740 = vsyncpa [#allocation3], 1 }
 0x6d1   :  { %741 = vsyncpa [#allocation6], 1 }
 0x6d2   :  { %742 = vsyncpa [#allocation9], 1 }
 0x6d3   :  { %743 = vsyncpa [#allocation4], 1 }
 0x6d4   :  { %744 = vsyncpa [#allocation12], 1 }

</bundles_post_ra>
